<compile_context>
chip_gen: v7x
topology: tpu7x:2x2x1
jax: 0.10.0
libtpu: 0.0.40
codegen_flags: <defaults>
</compile_context>

<pallas_src>
import jax
import jax.numpy as jnp
from jax.experimental import pallas as pl
from jax.experimental.pallas import tpu as pltpu


def _round_up(n, m):
    return ((n + m - 1) // m) * m


def _make_kernel(tb, tp, num_valid_classes, inv_num_patches):
    """Fused patch-embed + ReLU + GAP + head + softmax kernel.

    Grid = (batch_tiles, patch_tiles).  Refs per step:
      patches_ref: (tb, tp, K_pad)  bf16
      w_embed_ref: (K_pad, D_pad)   bf16   (resident across the grid)
      w_head_ref : (D_pad, C_pad)   bf16   (resident)
      b_head_ref : (1, C_pad)       f32    (resident)
      out_ref    : (tb, C_pad)      f32    (same block across the patch axis)
      pooled_acc : (tb, D_pad)      f32    VMEM scratch accumulator
    """

    def kernel(patches_ref, w_embed_ref, w_head_ref, b_head_ref, out_ref,
               pooled_acc_ref):
        p = pl.program_id(1)
        last_p = pl.num_programs(1) - 1

        @pl.when(p == 0)
        def _init():
            pooled_acc_ref[...] = jnp.zeros_like(pooled_acc_ref)

        # One large MXU matmul over all (tb * tp) patch rows of this step.
        k_pad = patches_ref.shape[-1]
        x_blk = patches_ref[...].reshape(tb * tp, k_pad)          # bf16
        feats = jnp.dot(x_blk, w_embed_ref[...],
                        preferred_element_type=jnp.float32)       # f32 accum
        feats = jnp.maximum(feats, 0.0)                           # ReLU (f32)

        # Partial global-average-pool: per-image sum over this patch tile.
        d_pad = feats.shape[-1]
        pooled_acc_ref[...] += jnp.sum(feats.reshape(tb, tp, d_pad), axis=1)

        @pl.when(p == last_p)
        def _finalize():
            pooled = pooled_acc_ref[...] * inv_num_patches        # (tb, D_pad) f32

            # Classifier head (bf16 MXU operands, f32 accumulation + bias).
            logits = jnp.dot(pooled.astype(w_head_ref.dtype), w_head_ref[...],
                             preferred_element_type=jnp.float32)
            logits = logits + b_head_ref[...]                     # (tb, C_pad)

            # Mask padded class columns so they get zero probability.
            col = jax.lax.broadcasted_iota(jnp.int32, logits.shape, 1)
            logits = jnp.where(col < num_valid_classes, logits, -1e30)

            # Numerically stable softmax (== F.softmax(dim=-1)); one
            # reciprocal per row instead of a per-element divide.
            # (pl.reciprocal(..., approx=True) would move it to the EUP slot;
            #  exact reciprocal is kept for a bit-tight f32 epilogue.)
            m = jnp.max(logits, axis=-1, keepdims=True)
            e = jnp.exp(logits - m)
            s = jnp.sum(e, axis=-1, keepdims=True)
            out_ref[...] = e * pl.reciprocal(s, approx=False)

    return kernel


def _im2col(x_nchw, patch):
    """NCHW -> (B, P, K) patches with K ordered as (kh, kw, C)."""
    B, C, H, W = x_nchw.shape
    ph, pw = H // patch, W // patch
    x_nhwc = jnp.transpose(x_nchw, (0, 2, 3, 1))
    x_p = x_nhwc.reshape(B, ph, patch, pw, patch, C)
    x_p = jnp.transpose(x_p, (0, 1, 3, 2, 4, 5))
    return x_p.reshape(B, ph * pw, patch * patch * C)


def timm_classifier_forward(x_nchw, w_embed, w_head, b_head, *,
                            patch=4, batch_tile=8, patch_tile=None):
    """softmax(classifier(backbone(x)), dim=-1) via a fused Pallas kernel.

    x_nchw : (B, 3, H, W) f32 (PyTorch NCHW)
    w_embed: (patch*patch*3, D)
    w_head : (D, num_classes)
    b_head : (1, num_classes)
    returns: (B, num_classes) f32 probabilities
    """
    B, C, H, W = x_nchw.shape
    assert H % patch == 0 and W % patch == 0
    ph, pw = H // patch, W // patch
    P = ph * pw
    K = patch * patch * C
    D = w_embed.shape[1]
    num_classes = w_head.shape[1]
    assert w_embed.shape == (K, D)
    assert w_head.shape == (D, num_classes)
    assert b_head.shape == (1, num_classes)

    if patch_tile is None:
        patch_tile = P
    assert P % patch_tile == 0
    tp = patch_tile
    tb = batch_tile

    # ---- im2col in the wrapper ----
    # TODO(synk): fold this gather into the patches BlockSpec index_map on an
    # NHWC input to avoid one extra HBM round-trip of the largest tensor.
    patches = _im2col(x_nchw, patch)                               # (B, P, K)

    # ---- pad everything to hardware tiles (lanes=128, sublanes=8) ----
    K_pad = _round_up(K, 128)
    D_pad = _round_up(D, 128)
    C_pad = _round_up(num_classes, 128)
    B_pad = _round_up(B, tb)

    patches_p = jnp.pad(patches, ((0, B_pad - B), (0, 0), (0, K_pad - K)))
    patches_p = patches_p.astype(jnp.bfloat16)                     # bf16 MXU operand
    w_embed_p = jnp.pad(w_embed, ((0, K_pad - K), (0, D_pad - D))).astype(jnp.bfloat16)
    w_head_p = jnp.pad(w_head, ((0, D_pad - D),
                                (0, C_pad - num_classes))).astype(jnp.bfloat16)
    b_head_p = jnp.pad(b_head, ((0, 0),
                                (0, C_pad - num_classes))).astype(jnp.float32)

    grid = (B_pad // tb, P // tp)
    kernel = _make_kernel(tb, tp, num_classes, 1.0 / P)

    flops = 2 * B_pad * P * K_pad * D_pad + 2 * B_pad * D_pad * C_pad
    bytes_accessed = (patches_p.size * 2 + w_embed_p.size * 2 +
                      w_head_p.size * 2 + b_head_p.size * 4 + B_pad * C_pad * 4)

    out = pl.pallas_call(
        kernel,
        out_shape=jax.ShapeDtypeStruct((B_pad, C_pad), jnp.float32),
        grid_spec=pltpu.PrefetchScalarGridSpec(
            num_scalar_prefetch=0,
            grid=grid,
            in_specs=[
                # streamed patch tiles
                pl.BlockSpec((tb, tp, K_pad), lambda i, p: (i, p, 0)),
                # weights: constant block index -> DMA'd once, stay resident
                pl.BlockSpec((K_pad, D_pad), lambda i, p: (0, 0)),
                pl.BlockSpec((D_pad, C_pad), lambda i, p: (0, 0)),
                pl.BlockSpec((1, C_pad), lambda i, p: (0, 0)),
            ],
            # same output block across the patch axis -> accumulator pattern
            out_specs=pl.BlockSpec((tb, C_pad), lambda i, p: (i, 0)),
            scratch_shapes=[pltpu.VMEM((tb, D_pad), jnp.float32)],
        ),
        compiler_params=pltpu.CompilerParams(
            dimension_semantics=("parallel", "arbitrary"),
            # explicit scoped-VMEM budget; tiles here are tiny even for v7x's
            # 64 MiB physical VMEM (~double-buffered bf16 patch tile + weights)
            vmem_limit_bytes=32 * 1024 * 1024,
        ),
        cost_estimate=pl.CostEstimate(flops=flops,
                                      transcendentals=B_pad * C_pad,
                                      bytes_accessed=bytes_accessed),
    )(patches_p, w_embed_p, w_head_p, b_head_p)

    return out[:B, :num_classes]


def _reference_forward(x_nchw, w_embed, w_head, b_head, *, patch=4):
    """Pure-JAX reference with the same mixed-precision policy as the kernel
    (bf16 MXU operands, f32 accumulation & epilogue)."""
    patches = _im2col(x_nchw, patch)
    feats = jnp.einsum("bpk,kd->bpd",
                       patches.astype(jnp.bfloat16), w_embed.astype(jnp.bfloat16),
                       preferred_element_type=jnp.float32)
    feats = jnp.maximum(feats, 0.0)
    pooled = jnp.mean(feats, axis=1)
    logits = jnp.dot(pooled.astype(jnp.bfloat16), w_head.astype(jnp.bfloat16),
                     preferred_element_type=jnp.float32) + b_head
    return jax.nn.softmax(logits, axis=-1)


def _reference_forward_f32(x_nchw, w_embed, w_head, b_head, *, patch=4):
    """Full-f32 reference (PyTorch-equivalent math) for a semantic sanity check."""
    patches = _im2col(x_nchw, patch)
    feats = jnp.maximum(jnp.einsum("bpk,kd->bpd", patches, w_embed), 0.0)
    pooled = jnp.mean(feats, axis=1)
    logits = pooled @ w_head + b_head
    return jax.nn.softmax(logits, axis=-1)


if __name__ == "__main__":
    # Small deterministic shapes consistent with the module:
    # in_chans=3, num_classes=10.
    B, C_IN, H, W = 2, 3, 16, 16
    PATCH = 4
    HIDDEN = 32
    NUM_CLASSES = 10
    K = PATCH * PATCH * C_IN

    key = jax.random.PRNGKey(0)
    kx, ke, kw, kb, kx2 = jax.random.split(key, 5)
    x = jax.random.normal(kx, (B, C_IN, H, W), dtype=jnp.float32)
    w_embed = 0.1 * jax.random.normal(ke, (K, HIDDEN), dtype=jnp.float32)
    w_head = 0.1 * jax.random.normal(kw, (HIDDEN, NUM_CLASSES), dtype=jnp.float32)
    b_head = 0.1 * jax.random.normal(kb, (1, NUM_CLASSES), dtype=jnp.float32)

    # --- test 1: small batch (padded internally to one batch tile) ---
    probs = timm_classifier_forward(x, w_embed, w_head, b_head, patch=PATCH)
    jax.block_until_ready(probs)
    ref = _reference_forward(x, w_embed, w_head, b_head, patch=PATCH)
    assert probs.shape == (B, NUM_CLASSES)
    assert jnp.allclose(jnp.sum(probs, axis=-1), 1.0, atol=1e-5)
    # matched mixed-precision reference (tight); f32 reference (bf16-operand slack)
    assert jnp.allclose(probs, ref, atol=1e-4, rtol=1e-4)
    ref_f32 = _reference_forward_f32(x, w_embed, w_head, b_head, patch=PATCH)
    assert jnp.allclose(probs, ref_f32, atol=1e-2)

    # --- test 2: larger batch + patch tiling: exercises grid=(2,2), the
    #     "parallel" batch axis and the pl.when accumulator finalize path ---
    B2 = 16
    x2 = jax.random.normal(kx2, (B2, C_IN, H, W), dtype=jnp.float32)
    probs2 = timm_classifier_forward(x2, w_embed, w_head, b_head,
                                     patch=PATCH, batch_tile=8, patch_tile=8)
    jax.block_until_ready(probs2)
    ref2 = _reference_forward(x2, w_embed, w_head, b_head, patch=PATCH)
    assert probs2.shape == (B2, NUM_CLASSES)
    assert jnp.allclose(jnp.sum(probs2, axis=-1), 1.0, atol=1e-5)
    assert jnp.allclose(probs2, ref2, atol=1e-4, rtol=1e-4)

    print("KERNEL_OK")
</pallas_src>

<mosaic_0001>
module attributes {stable_mosaic.version = 11 : i64} {
  func.func @kernel(%arg0: i32, %arg1: i32, %arg2: memref<8x16x128xbf16, #tpu.memory_space<vmem>>, %arg3: memref<128x128xbf16, #tpu.memory_space<vmem>>, %arg4: memref<128x128xbf16, #tpu.memory_space<vmem>>, %arg5: memref<1x128xf32, #tpu.memory_space<vmem>>, %arg6: memref<8x128xf32, #tpu.memory_space<vmem>>, %arg7: memref<8x128xf32, #tpu.memory_space<vmem>>) attributes {dimension_semantics = [#tpu.dimension_semantics<parallel>, #tpu.dimension_semantics<arbitrary>], iteration_bounds = array<i64: 1, 1>, scalar_prefetch = 0 : i64, scratch_operands = 1 : i64, tpu.core_type = #tpu.core_type<tc>, window_params = [{transform_indices = @transform_0, window_bounds = array<i64: 8, 16, 128>}, {pipeline_mode = #tpu.pipeline_mode<synchronous>, transform_indices = @transform_1, window_bounds = array<i64: 128, 128>}, {pipeline_mode = #tpu.pipeline_mode<synchronous>, transform_indices = @transform_2, window_bounds = array<i64: 128, 128>}, {pipeline_mode = #tpu.pipeline_mode<synchronous>, transform_indices = @transform_3, window_bounds = array<i64: 1, 128>}, {transform_indices = @transform_4, window_bounds = array<i64: 8, 128>}]} {
    %c0_i32 = arith.constant 0 : i32
    %0 = arith.cmpi eq, %arg1, %c0_i32 : i32
    %1 = arith.extui %0 : i1 to i32
    %c0_i32_0 = arith.constant 0 : i32
    %2 = arith.cmpi ne, %1, %c0_i32_0 : i32
    scf.if %2 {
      %cst_13 = arith.constant 0.000000e+00 : f32
      %17 = vector.broadcast %cst_13 : f32 to vector<8x128xf32>
      %c0_14 = arith.constant 0 : index
      %c0_15 = arith.constant 0 : index
      %18 = vector.load %arg7[%c0_14, %c0_15] : memref<8x128xf32, #tpu.memory_space<vmem>>, vector<8x128xf32>
      tpu.vector_store %arg7[%c0_14, %c0_15], %17 {strides = array<i32>} : memref<8x128xf32, #tpu.memory_space<vmem>>, vector<8x128xf32>,
    } else {
    }
    %c0 = arith.constant 0 : index
    %c0_1 = arith.constant 0 : index
    %c0_2 = arith.constant 0 : index
    %3 = vector.load %arg2[%c0, %c0_1, %c0_2] : memref<8x16x128xbf16, #tpu.memory_space<vmem>>, vector<8x16x128xbf16>
    %4 = vector.shape_cast %3 : vector<8x16x128xbf16> to vector<128x128xbf16>
    %c0_3 = arith.constant 0 : index
    %c0_4 = arith.constant 0 : index
    %5 = vector.load %arg3[%c0_3, %c0_4] : memref<128x128xbf16, #tpu.memory_space<vmem>>, vector<128x128xbf16>
    %cst = arith.constant dense<0.000000e+00> : vector<128x128xf32>
    %6 = tpu.matmul %4, %5, %cst {dimension_numbers = #tpu.dot_dimension_numbers<[1], [0], [0], [1], [0, 0, 1, 1], [], []>} : vector<128x128xbf16>, vector<128x128xbf16>, vector<128x128xf32> -> vector<128x128xf32>
    %cst_5 = arith.constant 0.000000e+00 : f32
    %7 = vector.broadcast %cst_5 : f32 to vector<128x128xf32>
    %8 = arith.maximumf %6, %7 : vector<128x128xf32>
    %c0_6 = arith.constant 0 : index
    %c0_7 = arith.constant 0 : index
    %9 = vector.load %arg7[%c0_6, %c0_7] : memref<8x128xf32, #tpu.memory_space<vmem>>, vector<8x128xf32>
    %10 = vector.shape_cast %8 : vector<128x128xf32> to vector<8x16x128xf32>
    %cst_8 = arith.constant dense<0.000000e+00> : vector<8x128xf32>
    %11 = vector.multi_reduction <add>, %10, %cst_8 [1] : vector<8x16x128xf32> to vector<8x128xf32>
    %12 = arith.addf %9, %11 : vector<8x128xf32>
    %c0_9 = arith.constant 0 : index
    %c0_10 = arith.constant 0 : index
    %13 = vector.load %arg7[%c0_9, %c0_10] : memref<8x128xf32, #tpu.memory_space<vmem>>, vector<8x128xf32>
    tpu.vector_store %arg7[%c0_9, %c0_10], %12 {strides = array<i32>} : memref<8x128xf32, #tpu.memory_space<vmem>>, vector<8x128xf32>,
    %c0_i32_11 = arith.constant 0 : i32
    %14 = arith.cmpi eq, %arg1, %c0_i32_11 : i32
    %15 = arith.extui %14 : i1 to i32
    %c0_i32_12 = arith.constant 0 : i32
    %16 = arith.cmpi ne, %15, %c0_i32_12 : i32
    scf.if %16 {
      %c0_13 = arith.constant 0 : index
      %c0_14 = arith.constant 0 : index
      %17 = vector.load %arg7[%c0_13, %c0_14] : memref<8x128xf32, #tpu.memory_space<vmem>>, vector<8x128xf32>
      %cst_15 = arith.constant 6.250000e-02 : f32
      %18 = vector.broadcast %cst_15 : f32 to vector<8x128xf32>
      %19 = arith.mulf %17, %18 : vector<8x128xf32>
      %20 = arith.truncf %19 : vector<8x128xf32> to vector<8x128xbf16>
      %c0_16 = arith.constant 0 : index
      %c0_17 = arith.constant 0 : index
      %21 = vector.load %arg4[%c0_16, %c0_17] : memref<128x128xbf16, #tpu.memory_space<vmem>>, vector<128x128xbf16>
      %cst_18 = arith.constant dense<0.000000e+00> : vector<8x128xf32>
      %22 = tpu.matmul %20, %21, %cst_18 {dimension_numbers = #tpu.dot_dimension_numbers<[1], [0], [0], [1], [0, 0, 1, 1], [], []>} : vector<8x128xbf16>, vector<128x128xbf16>, vector<8x128xf32> -> vector<8x128xf32>
      %c0_19 = arith.constant 0 : index
      %c0_20 = arith.constant 0 : index
      %23 = vector.load %arg5[%c0_19, %c0_20] : memref<1x128xf32, #tpu.memory_space<vmem>>, vector<1x128xf32>
      %24 = vector.broadcast %23 : vector<1x128xf32> to vector<8x128xf32>
      %25 = arith.addf %22, %24 : vector<8x128xf32>
      %26 = tpu.iota {dimensions = array<i32: 1>} : vector<8x128xi32>
      %c10_i32 = arith.constant 10 : i32
      %27 = vector.broadcast %c10_i32 : i32 to vector<8x128xi32>
      %28 = arith.cmpi slt, %26, %27 : vector<8x128xi32>
      %cst_21 = arith.constant -1.000000e+30 : f32
      %29 = vector.broadcast %cst_21 : f32 to vector<8x128xf32>
      %30 = arith.select %28, %25, %29 : vector<8x128xi1>, vector<8x128xf32>
      %cst_22 = arith.constant dense<0xFF800000> : vector<8xf32>
      %31 = vector.multi_reduction <maximumf>, %30, %cst_22 [1] : vector<8x128xf32> to vector<8xf32>
      %32 = vector.shape_cast %31 : vector<8xf32> to vector<8x1xf32>
      %33 = vector.broadcast %32 : vector<8x1xf32> to vector<8x128xf32>
      %34 = arith.subf %30, %33 : vector<8x128xf32>
      %35 = math.exp %34 : vector<8x128xf32>
      %cst_23 = arith.constant dense<0.000000e+00> : vector<8xf32>
      %36 = vector.multi_reduction <add>, %35, %cst_23 [1] : vector<8x128xf32> to vector<8xf32>
      %37 = vector.shape_cast %36 : vector<8xf32> to vector<8x1xf32>
      %38 = tpu.reciprocal %37 : vector<8x1xf32> -> vector<8x1xf32>
      %39 = vector.broadcast %38 : vector<8x1xf32> to vector<8x128xf32>
      %40 = arith.mulf %35, %39 : vector<8x128xf32>
      %c0_24 = arith.constant 0 : index
      %c0_25 = arith.constant 0 : index
      %41 = vector.load %arg6[%c0_24, %c0_25] : memref<8x128xf32, #tpu.memory_space<vmem>>, vector<8x128xf32>
      tpu.vector_store %arg6[%c0_24, %c0_25], %40 {strides = array<i32>} : memref<8x128xf32, #tpu.memory_space<vmem>>, vector<8x128xf32>,
    } else {
    }
    return
  }
  func.func @transform_0(%arg0: i32, %arg1: i32) -> (i32, i32, i32) {
    %c0_i32 = arith.constant 0 : i32
    %c0_i32_0 = arith.constant 0 : i32
    return %arg0, %arg1, %c0_i32 : i32, i32, i32
  }
  func.func @transform_1(%arg0: i32, %arg1: i32) -> (i32, i32) {
    %c0_i32 = arith.constant 0 : i32
    %c0_i32_0 = arith.constant 0 : i32
    %c0_i32_1 = arith.constant 0 : i32
    return %c0_i32, %c0_i32_0 : i32, i32
  }
  func.func @transform_2(%arg0: i32, %arg1: i32) -> (i32, i32) {
    %c0_i32 = arith.constant 0 : i32
    %c0_i32_0 = arith.constant 0 : i32
    %c0_i32_1 = arith.constant 0 : i32
    return %c0_i32, %c0_i32_0 : i32, i32
  }
  func.func @transform_3(%arg0: i32, %arg1: i32) -> (i32, i32) {
    %c0_i32 = arith.constant 0 : i32
    %c0_i32_0 = arith.constant 0 : i32
    %c0_i32_1 = arith.constant 0 : i32
    return %c0_i32, %c0_i32_0 : i32, i32
  }
  func.func @transform_4(%arg0: i32, %arg1: i32) -> (i32, i32) {
    %c0_i32 = arith.constant 0 : i32
    %c0_i32_0 = arith.constant 0 : i32
    return %arg0, %c0_i32 : i32, i32
  }
}

</mosaic_0001>

<bundles_post_ra>
// kernel: tpu_custom_call.1
= control target key start
LH: loop header
LB: loop body
LE: loop exit
PB: predicated region body
PF: predicated region fallthrough
CT: control target
= control target key end

     0   :  { %9 = vsyncpa [#allocation4], 0  ;;  %s867_s0 = inlined_call_operand.hbm [shape: bf16[8,16,128], index: 0, kind: input, shape index: {}]   ;;  %s868_s1 = inlined_call_operand.hbm [shape: bf16[128,128], index: 1, kind: input, shape index: {}]   ;;  %s869_s2 = inlined_call_operand.hbm [shape: bf16[128,128], index: 2, kind: input, shape index: {}]   ;;  %s870_s3 = inlined_call_operand.vmem [shape: f32[1,128], index: 3, kind: input, shape index: {}]   ;;  %s871_s4 = inlined_call_operand.hbm [shape: f32[8,128], index: 4, kind: output, shape index: {}]  }
   0x1   :  { %10 = vsyncpa [#allocation7], 0 }
   0x2   :  { %11 = vsyncpa [#allocation5], 0  ;;  %s767_s15 = smov [#allocation6]   ;;  %s768_s17 = smov [#allocation3]  }
   0x3   :  { %s29_s16 = sshll.u32 %s767_s15, 4  ;;  %s17_s18 = sshll.u32 %s768_s17, 4  ;;  %s30_s16 = int_to_ptr.vmem [resolvable:$true] %s29_s16  ;;  %s800_s18 = int_to_ptr.vmem [resolvable:$true] %s17_s18 }
   0x4   :  { %s673_s21 = scalar_lea.hbm %s868_s1, 1024 }
   0x5   :  { %p674_p0 = scmp.ne.s32.totalorder %s868_s1, %s673_s21  ;;  %p677_p1 = scmp.lt.u32.totalorder %s673_s21, %s868_s1 }
   0x7   :  { %p679_p2 = pnand %p677_p1, %p674_p0 }
   0x9   :  { %682 = shalt.err (!%p679_p2)
}
   0xa   :  { %s683_s26 = scalar_lea.vmem %s30_s16, 1024  ;;  %p688_p4 = scmp.lt.s32.totalorder %s30_s16, %s30_s16 }
   0xb   :  { %p684_p3 = scmp.ne.s32.totalorder %s30_s16, %s683_s26  ;;  %p689_p5 = scmp.lt.s32.totalorder %s683_s26, %s683_s26 }
   0xd   :  { %p690_p6 = por %p689_p5, %p688_p4 }
   0xf   :  { %p691_p7 = pnand %p690_p6, %p684_p3 }
  0x11   :  { %694 = shalt.err (!%p691_p7)
}
  0x12   :  { %s769_s27 = smov 64   ;;  %s770_s28 = smov 4  }
  0x13   :  { %35 = dma.hbm_to_vmem [thread:$0]  %s868_s1, 1024, %s30_s16, [#allocation7], %s769_s27, %s769_s27, %s770_s28  }
  0x14   :  { %s695_s7 = scalar_lea.hbm %s867_s0, 1024 }
  0x15   :  { %p696_p8 = scmp.ne.s32.totalorder %s867_s0, %s695_s7  ;;  %p699_p9 = scmp.lt.u32.totalorder %s695_s7, %s867_s0 }
  0x17   :  { %p701_p10 = pnand %p699_p9, %p696_p8 }
  0x19   :  { %704 = shalt.err (!%p701_p10)
}
  0x1a   :  { %s705_s12 = scalar_lea.vmem %s800_s18, 1024  ;;  %p710_p12 = scmp.lt.s32.totalorder %s800_s18, %s800_s18 }
  0x1b   :  { %p706_p11 = scmp.ne.s32.totalorder %s800_s18, %s705_s12  ;;  %p711_p13 = scmp.lt.s32.totalorder %s705_s12, %s705_s12 }
  0x1d   :  { %p712_p0 = por %p711_p13, %p710_p12 }
  0x1f   :  { %p713_p1 = pnand %p712_p0, %p706_p11 }
  0x21   :  { %716 = shalt.err (!%p713_p1)
}
  0x22   :  { %23 = dma.hbm_to_vmem [thread:$0]  %s867_s0, 1024, %s800_s18, [#allocation4], %s769_s27, %s769_s27, %s770_s28  }
  0x23   :  { %s771_s14 = smov [#allocation8]   ;;  %s717_s19 = scalar_lea.hbm %s869_s2, 1024 }
  0x24   :  { %s41_s15 = sshll.u32 %s771_s14, 4  ;;  %p718_p2 = scmp.ne.s32.totalorder %s869_s2, %s717_s19  ;;  %s42_s15 = int_to_ptr.vmem [resolvable:$true] %s41_s15 }
  0x25   :  { %p721_p3 = scmp.lt.u32.totalorder %s717_s19, %s869_s2 }
  0x27   :  { %p723_p4 = pnand %p721_p3, %p718_p2 }
  0x29   :  { %726 = shalt.err (!%p723_p4)
}
  0x2a   :  { %s727_s24 = scalar_lea.vmem %s42_s15, 1024  ;;  %p732_p6 = scmp.lt.s32.totalorder %s42_s15, %s42_s15 }
  0x2b   :  { %p728_p5 = scmp.ne.s32.totalorder %s42_s15, %s727_s24  ;;  %p733_p7 = scmp.lt.s32.totalorder %s727_s24, %s727_s24 }
  0x2d   :  { %p734_p8 = por %p733_p7, %p732_p6 }
  0x2f   :  { %p735_p9 = pnand %p734_p8, %p728_p5 }
  0x31   :  { %738 = shalt.err (!%p735_p9)
}
  0x32   :  { %47 = dma.hbm_to_vmem [thread:$0]  %s869_s2, 1024, %s42_s15, [#allocation7], %s769_s27, %s769_s27, %s770_s28  }
  0x33   :  { %761 = dma.done.wait [#allocation4], 1024  }
  0x34   :  { %762 = vsyncadd [#allocation4], 4294966272 }
  0x35   :  { %763 = dma.done.wait [#allocation7], 2048  }
  0x36   :  { %764 = vsyncadd [#allocation7], 4294965248  ;;  %v645_v0 = vld [vmem:[#allocation6] sm:$0xff]   ;;  %v646_v1 = vld [vmem:[#allocation6 + $0x8] sm:$0xff]   ;;  %v772_v17 = vmov 0.0   ;;  %vm773_vm0 = vmmov 0  }
  0x37   :  { %585 = vmatprep.subr.bf16.mxu0 %v645_v0  ;;  %v647_v2 = vld [vmem:[#allocation6 + $0x10] sm:$0xff]   ;;  %v648_v3 = vld [vmem:[#allocation6 + $0x18] sm:$0xff]   ;;  %v653_v4 = vld [vmem:[#allocation3] sm:$0xff]   ;;  %617 = vmatprep.subr.bf16.mxu1 %v772_v17  ;;  %vm371_vm1 = vcmask 1041409   ;;  %vm373_vm2 = vcmask 1042434   ;;  %vm375_vm3 = vcmask 1043459  }
  0x38   :  { %586 = vmatpush3.bf16.msra.mxu0 %v645_v0  ;;  %601 = vmatprep.mubr.bf16.mxu0 %v653_v4  ;;  %v649_v5 = vld [vmem:[#allocation6 + $0x20] sm:$0xff]   ;;  %v650_v6 = vld [vmem:[#allocation6 + $0x28] sm:$0xff]   ;;  %v651_v7 = vld [vmem:[#allocation6 + $0x30] sm:$0xff]   ;;  %vm377_vm4 = vcmask 1044484   ;;  %vm379_vm5 = vcmask 1045509   ;;  %vm381_vm6 = vcmask 1046534  }
  0x39   :  { %587 = vmatprep.subr.bf16.mxu0 %v646_v1  ;;  %v652_v8 = vld [vmem:[#allocation6 + $0x38] sm:$0xff]   ;;  %v654_v9 = vld [vmem:[#allocation3 + $0x8] sm:$0xff]   ;;  %v655_v10 = vld [vmem:[#allocation3 + $0x10] sm:$0xff]   ;;  %633 = vmatprep.mubr.msk.bf16.mxu1 %vm773_vm0, %v772_v17  ;;  %vm383_vm7 = vcmask 1047559   ;;  %s774_s26 = smov [#allocation9]  }
  0x3a   :  { %v656_v11 = vld [vmem:[#allocation3 + $0x18] sm:$0xff]   ;;  %v657_v12 = vld [vmem:[#allocation3 + $0x20] sm:$0xff]   ;;  %v658_v13 = vld [vmem:[#allocation3 + $0x28] sm:$0xff]   ;;  %s525_s27 = sshll.u32 %s774_s26, 4  ;;  %s526_s27 = int_to_ptr.vmem [resolvable:$true] %s525_s27 }
  0x3b   :  { %v659_v14 = vld [vmem:[#allocation3 + $0x30] sm:$0xff]   ;;  %v660_v15 = vld [vmem:[#allocation3 + $0x38] sm:$0xff]   ;;  %v661_v16 = vld [vmem:[#allocation8] sm:$0xff]   ;;  %p744_p11 = scmp.lt.s32.totalorder %s526_s27, %s526_s27 }
  0x3c   :  { %588 = vmatpush3.bf16.msra.mxu0 %v646_v1  ;;  %618 = vmatpush3.bf16.msra.mxu1 %v661_v16  ;;  %v662_v18 = vld [vmem:[#allocation8 + $0x8] sm:$0xff]   ;;  %v663_v19 = vld [vmem:[#allocation8 + $0x10] sm:$0xff]   ;;  %v664_v20 = vld [vmem:[#allocation8 + $0x18] sm:$0xff]  }
  0x3d   :  { %589 = vmatprep.subr.bf16.mxu0 %v647_v2  ;;  %619 = vmatprep.subr.bf16.mxu1 %v772_v17  ;;  %v665_v21 = vld [vmem:[#allocation8 + $0x20] sm:$0xff]   ;;  %v666_v22 = vld [vmem:[#allocation8 + $0x28] sm:$0xff]   ;;  %v667_v23 = vld [vmem:[#allocation8 + $0x30] sm:$0xff]  }
  0x3e   :  { %v668_v24 = vld [vmem:[#allocation8 + $0x38] sm:$0xff]  }
  0x40   :  { %590 = vmatpush3.bf16.msra.mxu0 %v647_v2  ;;  %620 = vmatpush3.bf16.msra.mxu1 %v662_v18 }
  0x41   :  { %591 = vmatprep.subr.bf16.mxu0 %v648_v3  ;;  %621 = vmatprep.subr.bf16.mxu1 %v772_v17 }
  0x44   :  { %592 = vmatpush3.bf16.msra.mxu0 %v648_v3  ;;  %622 = vmatpush3.bf16.msra.mxu1 %v663_v19 }
  0x45   :  { %593 = vmatprep.subr.bf16.mxu0 %v649_v5  ;;  %623 = vmatprep.subr.bf16.mxu1 %v772_v17 }
  0x48   :  { %594 = vmatpush3.bf16.msra.mxu0 %v649_v5  ;;  %624 = vmatpush3.bf16.msra.mxu1 %v664_v20 }
  0x49   :  { %595 = vmatprep.subr.bf16.mxu0 %v650_v6  ;;  %625 = vmatprep.subr.bf16.mxu1 %v772_v17 }
  0x4c   :  { %596 = vmatpush3.bf16.msra.mxu0 %v650_v6  ;;  %626 = vmatpush3.bf16.msra.mxu1 %v665_v21 }
  0x4d   :  { %597 = vmatprep.subr.bf16.mxu0 %v651_v7  ;;  %627 = vmatprep.subr.bf16.mxu1 %v772_v17 }
  0x50   :  { %598 = vmatpush3.bf16.msra.mxu0 %v651_v7  ;;  %628 = vmatpush3.bf16.msra.mxu1 %v666_v22 }
  0x51   :  { %599 = vmatprep.subr.bf16.mxu0 %v652_v8  ;;  %629 = vmatprep.subr.bf16.mxu1 %v772_v17 }
  0x54   :  { %600 = vmatpush3.bf16.msra.mxu0 %v652_v8  ;;  %630 = vmatpush3.bf16.msra.mxu1 %v667_v23 }
  0x55   :  { %631 = vmatprep.subr.bf16.mxu1 %v772_v17 }
  0x57   :  { %602 = vmatmul.mubr.bf16.vlgmr.msra.gmra.mrb[0].mxu0 %v654_v9 }
  0x58   :  { %605 = vmatprep.mubr.bf16.mxu0 %v655_v10  ;;  %632 = vmatpush3.bf16.msra.mxu1 %v668_v24 }
  0x5f   :  { %606 = vmatmul.mubr.bf16.gmra.mrb[4].mxu0 %v656_v11 }
  0x60   :  { %609 = vmatprep.mubr.bf16.mxu0 %v657_v12 }
  0x67   :  { %610 = vmatmul.mubr.bf16.gmra.mrb[8].mxu0 %v658_v13 }
  0x68   :  { %613 = vmatprep.mubr.bf16.mxu0 %v659_v14 }
  0x6f   :  { %614 = vmatmul.mubr.bf16.gmra.mrb[12].mxu0 %v660_v15 }
 0x12a   :  { %v603_v25 = vpop.f32.mrb[0].mxu0 }
 0x12b   :  { %v227_v26 = vpop.f32.mrb[1].mxu0  ;;  %v292_v28 = vmax.f32 %v603_v25, 0.0 }
 0x12c   :  { %v604_v27 = vpop.f32.mrb[2].mxu0  ;;  %v290_v31 = vmax.f32 %v227_v26, 0.0 }
 0x12d   :  { %v293_v29 = vmax.f32 %v604_v27, 0.0  ;;  %v230_v30 = vpop.f32.mrb[3].mxu0 }
 0x12e   :  { %v291_v32 = vmax.f32 %v230_v30, 0.0 }
 0x12f   :  { %v314_v33 = vadd.f32 %v293_v29, %v292_v28 }
 0x130   :  { %v307_v34 = vadd.f32 %v291_v32, %v290_v31 }
 0x131   :  { %v315_v35 = vrot.slane %v314_v33, 4 }
 0x132   :  { %v308_v36 = vrot.slane %v307_v34, 4  ;;  %v607_v37 = vpop.f32.mrb[4].mxu0 }
 0x133   :  { %v316_v38 = vadd.f32 %v315_v35, %v314_v33  ;;  %v243_v39 = vpop.f32.mrb[5].mxu0  ;;  %v296_v43 = vmax.f32 %v607_v37, 0.0 }
 0x134   :  { %v309_v40 = vadd.f32 %v308_v36, %v307_v34  ;;  %v608_v41 = vpop.f32.mrb[6].mxu0  ;;  %v294_v47 = vmax.f32 %v243_v39, 0.0 }
 0x135   :  { %v317_v42 = vrot.slane %v316_v38, 2  ;;  %v297_v44 = vmax.f32 %v608_v41, 0.0  ;;  %v246_v45 = vpop.f32.mrb[7].mxu0 }
 0x136   :  { %v310_v46 = vrot.slane %v309_v40, 2  ;;  %v295_v48 = vmax.f32 %v246_v45, 0.0 }
 0x137   :  { %v318_v49 = vadd.f32 %v317_v42, %v316_v38  ;;  %v328_v50 = vadd.f32 %v297_v44, %v296_v43 }
 0x138   :  { %v311_v51 = vadd.f32 %v310_v46, %v309_v40  ;;  %v321_v52 = vadd.f32 %v295_v48, %v294_v47 }
 0x139   :  { %v319_v53 = vrot.slane %v318_v49, 1  ;;  %v329_v54 = vrot.slane %v328_v50, 4 }
 0x13a   :  { %v312_v55 = vrot.slane %v311_v51, 1  ;;  %v322_v56 = vrot.slane %v321_v52, 4  ;;  %v611_v57 = vpop.f32.mrb[8].mxu0 }
 0x13b   :  { %v320_v58 = vadd.f32 %v319_v53, %v318_v49  ;;  %v330_v59 = vadd.f32 %v329_v54, %v328_v50  ;;  %v259_v60 = vpop.f32.mrb[9].mxu0  ;;  %v300_v1 = vmax.f32 %v611_v57, 0.0 }
 0x13c   :  { %v313_v61 = vadd.f32 %v312_v55, %v311_v51  ;;  %v323_v62 = vadd.f32 %v322_v56, %v321_v52  ;;  %v612_v63 = vpop.f32.mrb[10].mxu0  ;;  %v298_v6 = vmax.f32 %v259_v60, 0.0  ;;  %v551_v60 = vld [vmem:[%s870_s3] ss:$0 sm:$0xff]  ;;  %s739_s3 = scalar_lea.vmem %s526_s27, 128 }
 0x13d   :  { %v331_v0 = vrot.slane %v330_v59, 2  ;;  %v301_v2 = vmax.f32 %v612_v63, 0.0  ;;  %v262_v3 = vpop.f32.mrb[11].mxu0  ;;  %p740_p10 = scmp.ne.s32.totalorder %s526_s27, %s739_s3  ;;  %p745_p12 = scmp.lt.s32.totalorder %s739_s3, %s739_s3 }
 0x13e   :  { %v372_v4 = vsel %vm371_vm1, %v320_v58, %v313_v61  ;;  %v324_v5 = vrot.slane %v323_v62, 2  ;;  %v299_v7 = vmax.f32 %v262_v3, 0.0  ;;  %v505_v58 = vlaneseq }
 0x13f   :  { %v332_v8 = vadd.f32 %v331_v0, %v330_v59  ;;  %v342_v9 = vadd.f32 %v301_v2, %v300_v1  ;;  %p746_p13 = por %p745_p12, %p744_p11 }
 0x140   :  { %v325_v10 = vadd.f32 %v324_v5, %v323_v62  ;;  %v335_v11 = vadd.f32 %v299_v7, %v298_v6  ;;  %v506_v59 = vand.u32 127, %v505_v58 }
 0x141   :  { %v333_v12 = vrot.slane %v332_v8, 1  ;;  %v343_v13 = vrot.slane %v342_v9, 4  ;;  %p747_p0 = pnand %p746_p13, %p740_p10 }
 0x142   :  { %v326_v14 = vrot.slane %v325_v10, 1  ;;  %v336_v15 = vrot.slane %v335_v11, 4  ;;  %v615_v16 = vpop.f32.mrb[12].mxu0  ;;  %vm507_vm8 = vcmp.lt.s32.totalorder %v506_v59, 10 }
 0x143   :  { %v344_v17 = vadd.f32 %v343_v13, %v342_v9  ;;  %v275_v18 = vpop.f32.mrb[13].mxu0  ;;  %v334_v22 = vadd.f32 %v333_v12, %v332_v8  ;;  %v304_v24 = vmax.f32 %v615_v16, 0.0 }
 0x144   :  { %v327_v19 = vadd.f32 %v326_v14, %v325_v10  ;;  %v337_v20 = vadd.f32 %v336_v15, %v335_v11  ;;  %v616_v21 = vpop.f32.mrb[14].mxu0  ;;  %v302_v29 = vmax.f32 %v275_v18, 0.0 }
 0x145   :  { %v345_v23 = vrot.slane %v344_v17, 2  ;;  %v305_v25 = vmax.f32 %v616_v21, 0.0  ;;  %v278_v26 = vpop.f32.mrb[15].mxu0 }
 0x146   :  { %v374_v27 = vsel %vm373_vm2, %v327_v19, %v372_v4  ;;  %v338_v28 = vrot.slane %v337_v20, 2  ;;  %v303_v30 = vmax.f32 %v278_v26, 0.0 }
 0x147   :  { %v346_v31 = vadd.f32 %v345_v23, %v344_v17  ;;  %v356_v32 = vadd.f32 %v305_v25, %v304_v24  ;;  %v376_v33 = vsel %vm375_vm3, %v334_v22, %v374_v27 }
 0x148   :  { %v339_v34 = vadd.f32 %v338_v28, %v337_v20  ;;  %v349_v35 = vadd.f32 %v303_v30, %v302_v29 }
 0x149   :  { %v347_v36 = vrot.slane %v346_v31, 1  ;;  %v357_v37 = vrot.slane %v356_v32, 4 }
 0x14a   :  { %v340_v38 = vrot.slane %v339_v34, 1  ;;  %v350_v39 = vrot.slane %v349_v35, 4 }
 0x14b   :  { %v358_v40 = vadd.f32 %v357_v37, %v356_v32  ;;  %v348_v43 = vadd.f32 %v347_v36, %v346_v31 }
 0x14c   :  { %v341_v41 = vadd.f32 %v340_v38, %v339_v34  ;;  %v351_v42 = vadd.f32 %v350_v39, %v349_v35 }
 0x14d   :  { %v359_v44 = vrot.slane %v358_v40, 2 }
 0x14e   :  { %v352_v45 = vrot.slane %v351_v42, 2  ;;  %v378_v46 = vsel %vm377_vm4, %v341_v41, %v376_v33 }
 0x14f   :  { %v360_v47 = vadd.f32 %v359_v44, %v358_v40  ;;  %v380_v48 = vsel %vm379_vm5, %v348_v43, %v378_v46 }
 0x150   :  { %v353_v49 = vadd.f32 %v352_v45, %v351_v42 }
 0x151   :  { %v361_v50 = vrot.slane %v360_v47, 1 }
 0x152   :  { %v354_v51 = vrot.slane %v353_v49, 1 }
 0x153   :  { %v362_v53 = vadd.f32 %v361_v50, %v360_v47 }
 0x154   :  { %v355_v52 = vadd.f32 %v354_v51, %v353_v49 }
 0x156   :  { %v382_v54 = vsel %vm381_vm6, %v355_v52, %v380_v48 }
 0x157   :  { %v384_v55 = vsel %vm383_vm7, %v362_v53, %v382_v54 }
 0x158   :  { %v392_v56 = vmul.f32 0.0625, %v384_v55 }
 0x15a   :  { %v393_v57 = vpack.c.bf16 %v392_v56, %v392_v56 }
 0x15c   :  { %634 = vmatmul.mubr.bf16.vlgmr.msra.gmra.mrb[0].mxu1 %v393_v57 }
 0x22f   :  { %v499_v61 = vpop.f32.mrb[0].mxu1 }
 0x230   :  { %v500_v62 = vadd.f32 %v551_v60, %v499_v61  ;;  %v635_v63 = vpop.f32.mrb[1].mxu1 }
 0x231   :  { %v502_v0 = vpop.f32.mrb[2].mxu1 }
 0x232   :  { %v636_v1 = vpop.f32.mrb[3].mxu1  ;;  %v508_v2 = vsel %vm507_vm8, %v500_v62, -1e+30 }
 0x233   :  { %509 = vmax.xlane.f32.xlu0 %v508_v2 }
 0x2c0   :  { %v510_v3 = vpop.xlane.xlu0 %509 }
 0x2c1   :  { %v511_v4 = vsub.f32 %v508_v2, %v510_v3 }
 0x2c3   :  { %v512_v5 = vmul.f32 1.442695, %v511_v4 }
 0x2c5   :  { %669 = vpow2.f32 %v512_v5 }
 0x2cf   :  { %v670_v6 = vpop.eup %669 }
 0x2d0   :  { %514 = vadd.xlane.f32.xlu0 %v670_v6 }
 0x35d   :  { %v515_v7 = vpop.xlane.xlu0 %514 }
 0x35e   :  { %671 = vrcp.f32 %v515_v7 }
 0x368   :  { %v672_v8 = vpop.eup %671 }
 0x369   :  { %v517_v9 = vmul.f32 %v672_v8, %v670_v6 }
 0x36b   :  { %518 = vst [vmem:[#allocation9] sm:$0xff] %v517_v9 }
 0x36c   :  { %750 = shalt.err (!%p747_p0)
}
 0x36d   :  { %s751_s30 = scalar_lea.hbm %s871_s4, 128 }
 0x36e   :  { %p752_p1 = scmp.ne.s32.totalorder %s871_s4, %s751_s30  ;;  %p755_p2 = scmp.lt.u32.totalorder %s751_s30, %s871_s4 }
 0x370   :  { %p757_p3 = pnand %p755_p2, %p752_p1 }
 0x372   :  { %760 = shalt.err (!%p757_p3)
}
 0x373   :  { %528 = dma.vmem_to_hbm [thread:$0]  %s526_s27, 128, %s871_s4, [#allocation5]  }
 0x374   :  { %765 = dma.done.wait [#allocation5], 128  }
 0x375   :  { %766 = vsyncadd [#allocation5], 4294967168 }
 0x376   :  { %532 = vsyncpa [#allocation4], 1 }
 0x377   :  { %533 = vsyncpa [#allocation7], 1 }
 0x378   :  { %534 = vsyncpa [#allocation5], 1 }

</bundles_post_ra>
